<compile_context>
chip_gen: v7x
topology: tpu7x:2x2x1
jax: 0.10.0
libtpu: 0.0.40
codegen_flags: <defaults>
</compile_context>

<pallas_src>
import functools

import jax
import jax.numpy as jnp
from jax.experimental import pallas as pl
from jax.experimental.pallas import tpu as pltpu

INPUT_SIZE = 11
HIDDEN = 16


def _lstm_cost_kernel(x_ref, wih_ref, whh_ref, b_ref, fcw_ref, fcb_ref, out_ref,
                      *, seq_len, batch, hidden):
    """Whole forward in VMEM: hoisted input projection + unrolled recurrence.

    x_ref   : (T*B, 11)  time-major flattened input (row = t*B + b)
    wih_ref : (11, 4H)   W_ih^T, gate columns ordered (i, f, o, g)
    whh_ref : (H, 4H)    W_hh^T, gate columns ordered (i, f, o, g)
    b_ref   : (1, 4H)    b_ih + b_hh, same column order
    fcw_ref : (H, 1)     fc weight^T
    fcb_ref : (1, 1)     fc bias
    out_ref : (B, 1)
    """
    T, B, H = seq_len, batch, hidden

    # Hoisted input projection + bias: one matmul for all timesteps, entirely
    # off the serial recurrence chain.
    xp = (jnp.dot(x_ref[...], wih_ref[...], preferred_element_type=jnp.float32)
          + b_ref[...])                                     # (T*B, 4H)

    whh = whh_ref[...]                                      # (H, 4H), loaded once
    h = jnp.zeros((B, H), jnp.float32)
    c = jnp.zeros((B, H), jnp.float32)

    # Static unroll over time: only h @ W_hh + gate nonlinearities remain on
    # the serial chain.
    for t in range(T):
        gates = xp[t * B:(t + 1) * B, :] + jnp.dot(
            h, whh, preferred_element_type=jnp.float32)     # (B, 4H)
        sig = jax.nn.sigmoid(gates[:, :3 * H])              # i | f | o in one pass
        g_g = jnp.tanh(gates[:, 3 * H:])                    # g in one pass
        i_g = sig[:, 0 * H:1 * H]
        f_g = sig[:, 1 * H:2 * H]
        o_g = sig[:, 2 * H:3 * H]
        c = f_g * c + i_g * g_g
        h = o_g * jnp.tanh(c)

    # out = fc(relu(h_T))
    h_relu = jnp.maximum(h, 0.0)
    out_ref[...] = (jnp.dot(h_relu, fcw_ref[...],
                            preferred_element_type=jnp.float32)
                    + fcb_ref[...]).astype(out_ref.dtype)


def prepare_params(w_ih, w_hh, b_ih, b_hh, fc_w, fc_b):
    """One-time parameter preprocessing (kept out of the per-call jit path).

    PyTorch packs LSTM gates as (i, f, g, o) row blocks; we transpose and
    repack columns to (i, f, o, g) so all sigmoid gates are contiguous.
    """
    H = HIDDEN
    perm = jnp.concatenate([
        jnp.arange(0 * H, 1 * H),   # i
        jnp.arange(1 * H, 2 * H),   # f
        jnp.arange(3 * H, 4 * H),   # o
        jnp.arange(2 * H, 3 * H),   # g
    ])
    w_ih_t = jnp.transpose(w_ih).astype(jnp.float32)[:, perm]         # (11, 4H)
    w_hh_t = jnp.transpose(w_hh).astype(jnp.float32)[:, perm]         # (H, 4H)
    bias = (b_ih + b_hh).astype(jnp.float32)[perm].reshape(1, 4 * H)  # (1, 4H)
    fc_w_t = jnp.transpose(fc_w).astype(jnp.float32)                  # (H, 1)
    fc_b2 = fc_b.reshape(1, 1).astype(jnp.float32)                    # (1, 1)
    return w_ih_t, w_hh_t, bias, fc_w_t, fc_b2


@jax.jit
def cost_model_forward(x, w_ih_t, w_hh_t, bias, fc_w_t, fc_b2):
    """x: (B, T, 11) batch_first; params pre-processed via prepare_params()."""
    B, T, D = x.shape
    assert D == INPUT_SIZE
    H = HIDDEN

    # Tiny activation relayout only: (B, T, 11) -> time-major-flat (T*B, 11)
    # so the kernel slices a contiguous (B, 4H) block per (static) timestep.
    x_tm = jnp.transpose(x, (1, 0, 2)).reshape(T * B, D).astype(jnp.float32)

    vmem_spec = pl.BlockSpec(memory_space=pltpu.MemorySpace.VMEM)
    kernel = functools.partial(_lstm_cost_kernel, seq_len=T, batch=B, hidden=H)

    # NOTE(v7x): no grid needed at this size (latency-bound on one TC); for
    # large batches add a leading "parallel" grid axis over batch chunks.
    out = pl.pallas_call(
        kernel,
        out_shape=jax.ShapeDtypeStruct((B, 1), jnp.float32),
        in_specs=[vmem_spec] * 6,
        out_specs=vmem_spec,
    )(x_tm, w_ih_t, w_hh_t, bias, fc_w_t, fc_b2)
    return out


def _xavier_normal(key, shape):
    fan_out, fan_in = shape
    std = (2.0 / (fan_in + fan_out)) ** 0.5
    return std * jax.random.normal(key, shape, dtype=jnp.float32)


def _reference_forward(x, w_ih, w_hh, b_ih, b_hh, fc_w, fc_b):
    """Pure-JAX reference of the PyTorch forward (original i,f,g,o packing)."""
    B, T, D = x.shape
    H = HIDDEN
    h = jnp.zeros((B, H), jnp.float32)
    c = jnp.zeros((B, H), jnp.float32)
    for t in range(T):
        gates = x[:, t, :] @ w_ih.T + h @ w_hh.T + b_ih + b_hh
        i = jax.nn.sigmoid(gates[:, 0 * H:1 * H])
        f = jax.nn.sigmoid(gates[:, 1 * H:2 * H])
        g = jnp.tanh(gates[:, 2 * H:3 * H])
        o = jax.nn.sigmoid(gates[:, 3 * H:4 * H])
        c = f * c + i * g
        h = o * jnp.tanh(c)
    return jnp.maximum(h, 0.0) @ fc_w.T + fc_b


if __name__ == "__main__":
    key = jax.random.PRNGKey(0)
    k_x, k_wih, k_whh, k_fcw = jax.random.split(key, 4)

    B, T = 2, 8
    H = HIDDEN

    # Inputs
    x = jax.random.normal(k_x, (B, T, INPUT_SIZE), dtype=jnp.float32)

    # Parameters (xavier-normal weights, zero biases — matches init_weights).
    w_ih = _xavier_normal(k_wih, (4 * H, INPUT_SIZE))   # (64, 11)
    w_hh = _xavier_normal(k_whh, (4 * H, H))            # (64, 16)
    b_ih = jnp.zeros((4 * H,), jnp.float32)
    b_hh = jnp.zeros((4 * H,), jnp.float32)
    fc_w = _xavier_normal(k_fcw, (1, H))                # (1, 16)
    fc_b = jnp.zeros((1,), jnp.float32)

    # One-time parameter preprocessing (outside the jitted per-call path).
    params = prepare_params(w_ih, w_hh, b_ih, b_hh, fc_w, fc_b)
    params = jax.tree_util.tree_map(jax.block_until_ready, params)

    out = cost_model_forward(x, *params)
    out = jax.block_until_ready(out)

    ref = _reference_forward(x, w_ih, w_hh, b_ih, b_hh, fc_w, fc_b)
    assert out.shape == (B, 1)
    assert bool(jnp.all(jnp.isfinite(out)))
    assert jnp.allclose(out, ref, rtol=1e-3, atol=1e-3)

    print("KERNEL_OK")
</pallas_src>

<mosaic_0001>
module attributes {stable_mosaic.version = 11 : i64} {
  func.func @_lstm_cost_kernel(%arg0: memref<16x11xf32, #tpu.memory_space<vmem>>, %arg1: memref<11x64xf32, #tpu.memory_space<vmem>>, %arg2: memref<16x64xf32, #tpu.memory_space<vmem>>, %arg3: memref<1x64xf32, #tpu.memory_space<vmem>>, %arg4: memref<16x1xf32, #tpu.memory_space<vmem>>, %arg5: memref<1x1xf32, #tpu.memory_space<vmem>>, %arg6: memref<2x1xf32, #tpu.memory_space<vmem>>) attributes {dimension_semantics = [], scalar_prefetch = 0 : i64, scratch_operands = 0 : i64, tpu.core_type = #tpu.core_type<tc>} {
    %c0 = arith.constant 0 : index
    %c0_0 = arith.constant 0 : index
    %0 = vector.load %arg0[%c0, %c0_0] : memref<16x11xf32, #tpu.memory_space<vmem>>, vector<16x11xf32>
    %c0_1 = arith.constant 0 : index
    %c0_2 = arith.constant 0 : index
    %1 = vector.load %arg1[%c0_1, %c0_2] : memref<11x64xf32, #tpu.memory_space<vmem>>, vector<11x64xf32>
    %cst = arith.constant dense<0.000000e+00> : vector<16x64xf32>
    %2 = tpu.matmul %0, %1, %cst {dimension_numbers = #tpu.dot_dimension_numbers<[1], [0], [0], [1], [0, 0, 1, 1], [], []>} : vector<16x11xf32>, vector<11x64xf32>, vector<16x64xf32> -> vector<16x64xf32>
    %c0_3 = arith.constant 0 : index
    %c0_4 = arith.constant 0 : index
    %3 = vector.load %arg3[%c0_3, %c0_4] : memref<1x64xf32, #tpu.memory_space<vmem>>, vector<1x64xf32>
    %4 = vector.broadcast %3 : vector<1x64xf32> to vector<16x64xf32>
    %5 = arith.addf %2, %4 : vector<16x64xf32>
    %c0_5 = arith.constant 0 : index
    %c0_6 = arith.constant 0 : index
    %6 = vector.load %arg2[%c0_5, %c0_6] : memref<16x64xf32, #tpu.memory_space<vmem>>, vector<16x64xf32>
    %cst_7 = arith.constant 0.000000e+00 : f32
    %7 = vector.broadcast %cst_7 : f32 to vector<2x16xf32>
    %cst_8 = arith.constant 0.000000e+00 : f32
    %8 = vector.broadcast %cst_8 : f32 to vector<2x16xf32>
    %9 = vector.extract_strided_slice %5 {offsets = [0, 0], sizes = [2, 64], strides = [1, 1]} : vector<16x64xf32> to vector<2x64xf32>
    %cst_9 = arith.constant dense<0.000000e+00> : vector<2x64xf32>
    %10 = tpu.matmul %7, %6, %cst_9 {dimension_numbers = #tpu.dot_dimension_numbers<[1], [0], [0], [1], [0, 0, 1, 1], [], []>} : vector<2x16xf32>, vector<16x64xf32>, vector<2x64xf32> -> vector<2x64xf32>
    %11 = arith.addf %9, %10 : vector<2x64xf32>
    %12 = vector.extract_strided_slice %11 {offsets = [0, 0], sizes = [2, 48], strides = [1, 1]} : vector<2x64xf32> to vector<2x48xf32>
    %13 = arith.negf %12 : vector<2x48xf32>
    %14 = math.exp %13 : vector<2x48xf32>
    %cst_10 = arith.constant 1.000000e+00 : f32
    %15 = vector.broadcast %cst_10 : f32 to vector<2x48xf32>
    %16 = arith.addf %15, %14 : vector<2x48xf32>
    %17 = arith.divf %15, %16 : vector<2x48xf32>
    %18 = vector.extract_strided_slice %11 {offsets = [0, 48], sizes = [2, 16], strides = [1, 1]} : vector<2x64xf32> to vector<2x16xf32>
    %19 = math.tanh %18 : vector<2x16xf32>
    %20 = vector.extract_strided_slice %17 {offsets = [0, 0], sizes = [2, 16], strides = [1, 1]} : vector<2x48xf32> to vector<2x16xf32>
    %21 = vector.extract_strided_slice %17 {offsets = [0, 16], sizes = [2, 16], strides = [1, 1]} : vector<2x48xf32> to vector<2x16xf32>
    %22 = vector.extract_strided_slice %17 {offsets = [0, 32], sizes = [2, 16], strides = [1, 1]} : vector<2x48xf32> to vector<2x16xf32>
    %23 = arith.mulf %21, %8 : vector<2x16xf32>
    %24 = arith.mulf %20, %19 : vector<2x16xf32>
    %25 = arith.addf %23, %24 : vector<2x16xf32>
    %26 = math.tanh %25 : vector<2x16xf32>
    %27 = arith.mulf %22, %26 : vector<2x16xf32>
    %28 = vector.extract_strided_slice %5 {offsets = [2, 0], sizes = [2, 64], strides = [1, 1]} : vector<16x64xf32> to vector<2x64xf32>
    %cst_11 = arith.constant dense<0.000000e+00> : vector<2x64xf32>
    %29 = tpu.matmul %27, %6, %cst_11 {dimension_numbers = #tpu.dot_dimension_numbers<[1], [0], [0], [1], [0, 0, 1, 1], [], []>} : vector<2x16xf32>, vector<16x64xf32>, vector<2x64xf32> -> vector<2x64xf32>
    %30 = arith.addf %28, %29 : vector<2x64xf32>
    %31 = vector.extract_strided_slice %30 {offsets = [0, 0], sizes = [2, 48], strides = [1, 1]} : vector<2x64xf32> to vector<2x48xf32>
    %32 = arith.negf %31 : vector<2x48xf32>
    %33 = math.exp %32 : vector<2x48xf32>
    %cst_12 = arith.constant 1.000000e+00 : f32
    %34 = vector.broadcast %cst_12 : f32 to vector<2x48xf32>
    %35 = arith.addf %34, %33 : vector<2x48xf32>
    %36 = arith.divf %34, %35 : vector<2x48xf32>
    %37 = vector.extract_strided_slice %30 {offsets = [0, 48], sizes = [2, 16], strides = [1, 1]} : vector<2x64xf32> to vector<2x16xf32>
    %38 = math.tanh %37 : vector<2x16xf32>
    %39 = vector.extract_strided_slice %36 {offsets = [0, 0], sizes = [2, 16], strides = [1, 1]} : vector<2x48xf32> to vector<2x16xf32>
    %40 = vector.extract_strided_slice %36 {offsets = [0, 16], sizes = [2, 16], strides = [1, 1]} : vector<2x48xf32> to vector<2x16xf32>
    %41 = vector.extract_strided_slice %36 {offsets = [0, 32], sizes = [2, 16], strides = [1, 1]} : vector<2x48xf32> to vector<2x16xf32>
    %42 = arith.mulf %40, %25 : vector<2x16xf32>
    %43 = arith.mulf %39, %38 : vector<2x16xf32>
    %44 = arith.addf %42, %43 : vector<2x16xf32>
    %45 = math.tanh %44 : vector<2x16xf32>
    %46 = arith.mulf %41, %45 : vector<2x16xf32>
    %47 = vector.extract_strided_slice %5 {offsets = [4, 0], sizes = [2, 64], strides = [1, 1]} : vector<16x64xf32> to vector<2x64xf32>
    %cst_13 = arith.constant dense<0.000000e+00> : vector<2x64xf32>
    %48 = tpu.matmul %46, %6, %cst_13 {dimension_numbers = #tpu.dot_dimension_numbers<[1], [0], [0], [1], [0, 0, 1, 1], [], []>} : vector<2x16xf32>, vector<16x64xf32>, vector<2x64xf32> -> vector<2x64xf32>
    %49 = arith.addf %47, %48 : vector<2x64xf32>
    %50 = vector.extract_strided_slice %49 {offsets = [0, 0], sizes = [2, 48], strides = [1, 1]} : vector<2x64xf32> to vector<2x48xf32>
    %51 = arith.negf %50 : vector<2x48xf32>
    %52 = math.exp %51 : vector<2x48xf32>
    %cst_14 = arith.constant 1.000000e+00 : f32
    %53 = vector.broadcast %cst_14 : f32 to vector<2x48xf32>
    %54 = arith.addf %53, %52 : vector<2x48xf32>
    %55 = arith.divf %53, %54 : vector<2x48xf32>
    %56 = vector.extract_strided_slice %49 {offsets = [0, 48], sizes = [2, 16], strides = [1, 1]} : vector<2x64xf32> to vector<2x16xf32>
    %57 = math.tanh %56 : vector<2x16xf32>
    %58 = vector.extract_strided_slice %55 {offsets = [0, 0], sizes = [2, 16], strides = [1, 1]} : vector<2x48xf32> to vector<2x16xf32>
    %59 = vector.extract_strided_slice %55 {offsets = [0, 16], sizes = [2, 16], strides = [1, 1]} : vector<2x48xf32> to vector<2x16xf32>
    %60 = vector.extract_strided_slice %55 {offsets = [0, 32], sizes = [2, 16], strides = [1, 1]} : vector<2x48xf32> to vector<2x16xf32>
    %61 = arith.mulf %59, %44 : vector<2x16xf32>
    %62 = arith.mulf %58, %57 : vector<2x16xf32>
    %63 = arith.addf %61, %62 : vector<2x16xf32>
    %64 = math.tanh %63 : vector<2x16xf32>
    %65 = arith.mulf %60, %64 : vector<2x16xf32>
    %66 = vector.extract_strided_slice %5 {offsets = [6, 0], sizes = [2, 64], strides = [1, 1]} : vector<16x64xf32> to vector<2x64xf32>
    %cst_15 = arith.constant dense<0.000000e+00> : vector<2x64xf32>
    %67 = tpu.matmul %65, %6, %cst_15 {dimension_numbers = #tpu.dot_dimension_numbers<[1], [0], [0], [1], [0, 0, 1, 1], [], []>} : vector<2x16xf32>, vector<16x64xf32>, vector<2x64xf32> -> vector<2x64xf32>
    %68 = arith.addf %66, %67 : vector<2x64xf32>
    %69 = vector.extract_strided_slice %68 {offsets = [0, 0], sizes = [2, 48], strides = [1, 1]} : vector<2x64xf32> to vector<2x48xf32>
    %70 = arith.negf %69 : vector<2x48xf32>
    %71 = math.exp %70 : vector<2x48xf32>
    %cst_16 = arith.constant 1.000000e+00 : f32
    %72 = vector.broadcast %cst_16 : f32 to vector<2x48xf32>
    %73 = arith.addf %72, %71 : vector<2x48xf32>
    %74 = arith.divf %72, %73 : vector<2x48xf32>
    %75 = vector.extract_strided_slice %68 {offsets = [0, 48], sizes = [2, 16], strides = [1, 1]} : vector<2x64xf32> to vector<2x16xf32>
    %76 = math.tanh %75 : vector<2x16xf32>
    %77 = vector.extract_strided_slice %74 {offsets = [0, 0], sizes = [2, 16], strides = [1, 1]} : vector<2x48xf32> to vector<2x16xf32>
    %78 = vector.extract_strided_slice %74 {offsets = [0, 16], sizes = [2, 16], strides = [1, 1]} : vector<2x48xf32> to vector<2x16xf32>
    %79 = vector.extract_strided_slice %74 {offsets = [0, 32], sizes = [2, 16], strides = [1, 1]} : vector<2x48xf32> to vector<2x16xf32>
    %80 = arith.mulf %78, %63 : vector<2x16xf32>
    %81 = arith.mulf %77, %76 : vector<2x16xf32>
    %82 = arith.addf %80, %81 : vector<2x16xf32>
    %83 = math.tanh %82 : vector<2x16xf32>
    %84 = arith.mulf %79, %83 : vector<2x16xf32>
    %85 = vector.extract_strided_slice %5 {offsets = [8, 0], sizes = [2, 64], strides = [1, 1]} : vector<16x64xf32> to vector<2x64xf32>
    %cst_17 = arith.constant dense<0.000000e+00> : vector<2x64xf32>
    %86 = tpu.matmul %84, %6, %cst_17 {dimension_numbers = #tpu.dot_dimension_numbers<[1], [0], [0], [1], [0, 0, 1, 1], [], []>} : vector<2x16xf32>, vector<16x64xf32>, vector<2x64xf32> -> vector<2x64xf32>
    %87 = arith.addf %85, %86 : vector<2x64xf32>
    %88 = vector.extract_strided_slice %87 {offsets = [0, 0], sizes = [2, 48], strides = [1, 1]} : vector<2x64xf32> to vector<2x48xf32>
    %89 = arith.negf %88 : vector<2x48xf32>
    %90 = math.exp %89 : vector<2x48xf32>
    %cst_18 = arith.constant 1.000000e+00 : f32
    %91 = vector.broadcast %cst_18 : f32 to vector<2x48xf32>
    %92 = arith.addf %91, %90 : vector<2x48xf32>
    %93 = arith.divf %91, %92 : vector<2x48xf32>
    %94 = vector.extract_strided_slice %87 {offsets = [0, 48], sizes = [2, 16], strides = [1, 1]} : vector<2x64xf32> to vector<2x16xf32>
    %95 = math.tanh %94 : vector<2x16xf32>
    %96 = vector.extract_strided_slice %93 {offsets = [0, 0], sizes = [2, 16], strides = [1, 1]} : vector<2x48xf32> to vector<2x16xf32>
    %97 = vector.extract_strided_slice %93 {offsets = [0, 16], sizes = [2, 16], strides = [1, 1]} : vector<2x48xf32> to vector<2x16xf32>
    %98 = vector.extract_strided_slice %93 {offsets = [0, 32], sizes = [2, 16], strides = [1, 1]} : vector<2x48xf32> to vector<2x16xf32>
    %99 = arith.mulf %97, %82 : vector<2x16xf32>
    %100 = arith.mulf %96, %95 : vector<2x16xf32>
    %101 = arith.addf %99, %100 : vector<2x16xf32>
    %102 = math.tanh %101 : vector<2x16xf32>
    %103 = arith.mulf %98, %102 : vector<2x16xf32>
    %104 = vector.extract_strided_slice %5 {offsets = [10, 0], sizes = [2, 64], strides = [1, 1]} : vector<16x64xf32> to vector<2x64xf32>
    %cst_19 = arith.constant dense<0.000000e+00> : vector<2x64xf32>
    %105 = tpu.matmul %103, %6, %cst_19 {dimension_numbers = #tpu.dot_dimension_numbers<[1], [0], [0], [1], [0, 0, 1, 1], [], []>} : vector<2x16xf32>, vector<16x64xf32>, vector<2x64xf32> -> vector<2x64xf32>
    %106 = arith.addf %104, %105 : vector<2x64xf32>
    %107 = vector.extract_strided_slice %106 {offsets = [0, 0], sizes = [2, 48], strides = [1, 1]} : vector<2x64xf32> to vector<2x48xf32>
    %108 = arith.negf %107 : vector<2x48xf32>
    %109 = math.exp %108 : vector<2x48xf32>
    %cst_20 = arith.constant 1.000000e+00 : f32
    %110 = vector.broadcast %cst_20 : f32 to vector<2x48xf32>
    %111 = arith.addf %110, %109 : vector<2x48xf32>
    %112 = arith.divf %110, %111 : vector<2x48xf32>
    %113 = vector.extract_strided_slice %106 {offsets = [0, 48], sizes = [2, 16], strides = [1, 1]} : vector<2x64xf32> to vector<2x16xf32>
    %114 = math.tanh %113 : vector<2x16xf32>
    %115 = vector.extract_strided_slice %112 {offsets = [0, 0], sizes = [2, 16], strides = [1, 1]} : vector<2x48xf32> to vector<2x16xf32>
    %116 = vector.extract_strided_slice %112 {offsets = [0, 16], sizes = [2, 16], strides = [1, 1]} : vector<2x48xf32> to vector<2x16xf32>
    %117 = vector.extract_strided_slice %112 {offsets = [0, 32], sizes = [2, 16], strides = [1, 1]} : vector<2x48xf32> to vector<2x16xf32>
    %118 = arith.mulf %116, %101 : vector<2x16xf32>
    %119 = arith.mulf %115, %114 : vector<2x16xf32>
    %120 = arith.addf %118, %119 : vector<2x16xf32>
    %121 = math.tanh %120 : vector<2x16xf32>
    %122 = arith.mulf %117, %121 : vector<2x16xf32>
    %123 = vector.extract_strided_slice %5 {offsets = [12, 0], sizes = [2, 64], strides = [1, 1]} : vector<16x64xf32> to vector<2x64xf32>
    %cst_21 = arith.constant dense<0.000000e+00> : vector<2x64xf32>
    %124 = tpu.matmul %122, %6, %cst_21 {dimension_numbers = #tpu.dot_dimension_numbers<[1], [0], [0], [1], [0, 0, 1, 1], [], []>} : vector<2x16xf32>, vector<16x64xf32>, vector<2x64xf32> -> vector<2x64xf32>
    %125 = arith.addf %123, %124 : vector<2x64xf32>
    %126 = vector.extract_strided_slice %125 {offsets = [0, 0], sizes = [2, 48], strides = [1, 1]} : vector<2x64xf32> to vector<2x48xf32>
    %127 = arith.negf %126 : vector<2x48xf32>
    %128 = math.exp %127 : vector<2x48xf32>
    %cst_22 = arith.constant 1.000000e+00 : f32
    %129 = vector.broadcast %cst_22 : f32 to vector<2x48xf32>
    %130 = arith.addf %129, %128 : vector<2x48xf32>
    %131 = arith.divf %129, %130 : vector<2x48xf32>
    %132 = vector.extract_strided_slice %125 {offsets = [0, 48], sizes = [2, 16], strides = [1, 1]} : vector<2x64xf32> to vector<2x16xf32>
    %133 = math.tanh %132 : vector<2x16xf32>
    %134 = vector.extract_strided_slice %131 {offsets = [0, 0], sizes = [2, 16], strides = [1, 1]} : vector<2x48xf32> to vector<2x16xf32>
    %135 = vector.extract_strided_slice %131 {offsets = [0, 16], sizes = [2, 16], strides = [1, 1]} : vector<2x48xf32> to vector<2x16xf32>
    %136 = vector.extract_strided_slice %131 {offsets = [0, 32], sizes = [2, 16], strides = [1, 1]} : vector<2x48xf32> to vector<2x16xf32>
    %137 = arith.mulf %135, %120 : vector<2x16xf32>
    %138 = arith.mulf %134, %133 : vector<2x16xf32>
    %139 = arith.addf %137, %138 : vector<2x16xf32>
    %140 = math.tanh %139 : vector<2x16xf32>
    %141 = arith.mulf %136, %140 : vector<2x16xf32>
    %142 = vector.extract_strided_slice %5 {offsets = [14, 0], sizes = [2, 64], strides = [1, 1]} : vector<16x64xf32> to vector<2x64xf32>
    %cst_23 = arith.constant dense<0.000000e+00> : vector<2x64xf32>
    %143 = tpu.matmul %141, %6, %cst_23 {dimension_numbers = #tpu.dot_dimension_numbers<[1], [0], [0], [1], [0, 0, 1, 1], [], []>} : vector<2x16xf32>, vector<16x64xf32>, vector<2x64xf32> -> vector<2x64xf32>
    %144 = arith.addf %142, %143 : vector<2x64xf32>
    %145 = vector.extract_strided_slice %144 {offsets = [0, 0], sizes = [2, 48], strides = [1, 1]} : vector<2x64xf32> to vector<2x48xf32>
    %146 = arith.negf %145 : vector<2x48xf32>
    %147 = math.exp %146 : vector<2x48xf32>
    %cst_24 = arith.constant 1.000000e+00 : f32
    %148 = vector.broadcast %cst_24 : f32 to vector<2x48xf32>
    %149 = arith.addf %148, %147 : vector<2x48xf32>
    %150 = arith.divf %148, %149 : vector<2x48xf32>
    %151 = vector.extract_strided_slice %144 {offsets = [0, 48], sizes = [2, 16], strides = [1, 1]} : vector<2x64xf32> to vector<2x16xf32>
    %152 = math.tanh %151 : vector<2x16xf32>
    %153 = vector.extract_strided_slice %150 {offsets = [0, 0], sizes = [2, 16], strides = [1, 1]} : vector<2x48xf32> to vector<2x16xf32>
    %154 = vector.extract_strided_slice %150 {offsets = [0, 16], sizes = [2, 16], strides = [1, 1]} : vector<2x48xf32> to vector<2x16xf32>
    %155 = vector.extract_strided_slice %150 {offsets = [0, 32], sizes = [2, 16], strides = [1, 1]} : vector<2x48xf32> to vector<2x16xf32>
    %156 = arith.mulf %154, %139 : vector<2x16xf32>
    %157 = arith.mulf %153, %152 : vector<2x16xf32>
    %158 = arith.addf %156, %157 : vector<2x16xf32>
    %159 = math.tanh %158 : vector<2x16xf32>
    %160 = arith.mulf %155, %159 : vector<2x16xf32>
    %cst_25 = arith.constant 0.000000e+00 : f32
    %161 = vector.broadcast %cst_25 : f32 to vector<2x16xf32>
    %162 = arith.maximumf %160, %161 : vector<2x16xf32>
    %c0_26 = arith.constant 0 : index
    %c0_27 = arith.constant 0 : index
    %163 = vector.load %arg4[%c0_26, %c0_27] : memref<16x1xf32, #tpu.memory_space<vmem>>, vector<16x1xf32>
    %cst_28 = arith.constant dense<0.000000e+00> : vector<2x1xf32>
    %164 = tpu.matmul %162, %163, %cst_28 {dimension_numbers = #tpu.dot_dimension_numbers<[1], [0], [0], [1], [0, 0, 1, 1], [], []>} : vector<2x16xf32>, vector<16x1xf32>, vector<2x1xf32> -> vector<2x1xf32>
    %c0_29 = arith.constant 0 : index
    %c0_30 = arith.constant 0 : index
    %165 = vector.load %arg5[%c0_29, %c0_30] : memref<1x1xf32, #tpu.memory_space<vmem>>, vector<1x1xf32>
    %166 = vector.broadcast %165 : vector<1x1xf32> to vector<2x1xf32>
    %167 = arith.addf %164, %166 : vector<2x1xf32>
    %c0_31 = arith.constant 0 : index
    %c0_32 = arith.constant 0 : index
    %168 = vector.load %arg6[%c0_31, %c0_32] : memref<2x1xf32, #tpu.memory_space<vmem>>, vector<2x1xf32>
    tpu.vector_store %arg6[%c0_31, %c0_32], %167 {strides = array<i32>} : memref<2x1xf32, #tpu.memory_space<vmem>>, vector<2x1xf32>,
    return
  }
}

</mosaic_0001>

<bundles_post_ra>
// kernel: cost_model_forward.1
= control target key start
LH: loop header
LB: loop body
LE: loop exit
PB: predicated region body
PF: predicated region fallthrough
CT: control target
= control target key end

     0   :  { %vm43_vm0 = vcmask 1042432   ;;  %vm36_vm1 = vcmask 89088   ;;  %vm1285_vm2 = vmmov 1   ;;  %v1286_v2 = vmov 0.0|0.0   ;;  %s1289_s8 = smov 80   ;;  %s1291_s9 = smov 96   ;;  %s1452_s1 = inlined_call_operand.vmem [shape: f32[11,64], index: 1, kind: input, shape index: {}]   ;;  %s1453_s0 = inlined_call_operand.vmem [shape: f32[16,11], index: 0, kind: input, shape index: {}]   ;;  %s1454_s2 = inlined_call_operand.vmem [shape: f32[16,64], index: 2, kind: input, shape index: {}]   ;;  %s1455_s3 = inlined_call_operand.vmem [shape: f32[1,64], index: 3, kind: input, shape index: {}]   ;;  %s1456_s4 = inlined_call_operand.vmem [shape: f32[16,1], index: 4, kind: input, shape index: {}]   ;;  %s1457_s5 = inlined_call_operand.<no memory space> [shape: f32[1,1], index: 5, kind: input, shape index: {}]   ;;  %s1458_s6 = inlined_call_operand.vmem [shape: f32[2,1], index: 6, kind: output, shape index: {}]  }
   0x1   :  { %v27_v0 = vld [vmem:[%s1452_s1] sm:$0xff]  ;;  %v28_v1 = vld [vmem:[%s1452_s1 + $0x8] sm:$0x7]  ;;  %vm1182_vm3 = vmpackc.low %vm43_vm0, %vm1285_vm2  ;;  %1187 = vmatprep.subr.bf16.mxu1 %v1286_v2  ;;  %vm1287_vm4 = vmmov 0   ;;  %v1288_v6 = vmov 0.0   ;;  %vm124_vm5 = vcmask 130048  }
   0x2   :  { %v1181_v3 = vpack.c.bf16 %v28_v1, %v27_v0  ;;  %v25_v4 = vld [vmem:[%s1453_s0] sm:$0xff]  ;;  %1122 = vmatprep.mubr.msk.f32.mxu1 %vm1287_vm4, %v1288_v6  ;;  %v123_v7 = vld [vmem:[%s1454_s2 + $0x8] sm:$0xff]  ;;  %vm1053_vm6 = vcmask 1024  }
   0x3   :  { %v122_v5 = vld [vmem:[%s1454_s2] sm:$0xff]  ;;  %1115 = vmatprep.mubr.msk.f32.mxu0 %vm36_vm1, %v25_v4  ;;  %v26_v9 = vld [vmem:[%s1453_s0 + $0x8] sm:$0xff] }
   0x4   :  { %1183 = vmatprep.subr.msk.bf16.mxu0 %vm1182_vm3, %v1181_v3  ;;  %v1346_v8 = vpack.c.bf16 %v123_v7, %v122_v5  ;;  %v1059_v10 = vld [vmem:[%s1455_s3] ss:$0 sm:$0xff]  ;;  %s1290_s3 = smov 16  }
   0x5   :  { %1186 = vmatpush3.bf16.msk.msra.mxu0 %vm1182_vm3, %v1181_v3 }
   0x6   :  { %1189 = vmatpush3.bf16.msra.mxu1 %v1346_v8  ;;  %1190 = vmatprep.subr.bf16.mxu0 %v1286_v2 }
   0x7   :  { %1193 = vmatprep.subr.bf16.mxu1 %v1286_v2 }
   0x8   :  { %1116 = vmatmul.mubr.msk.f32.vlgmr.msra.gmra.mrb[0].mxu0 %vm36_vm1, %v26_v9 }
   0x9   :  { %1123 = vmatmul.mubr.f32.vlgmr.msra.gmra.mrb[0].mxu1 %v1288_v6  ;;  %1192 = vmatpush3.bf16.msra.mxu0 %v1346_v8 }
   0xa   :  { %1129 = vmatprep.mubr.msk.f32.mxu0 %vm1287_vm4, %v1288_v6  ;;  %1195 = vmatpush3.bf16.msra.mxu1 %v1346_v8 }
   0xb   :  { %1136 = vmatprep.mubr.msk.f32.mxu1 %vm1287_vm4, %v1288_v6  ;;  %1196 = vmatprep.subr.bf16.mxu0 %v1286_v2 }
   0xc   :  { %1199 = vmatprep.subr.bf16.mxu1 %v1286_v2 }
  0xdb   :  { %v1117_v11 = vpop.f32.mrb[0].mxu0 }
  0xdc   :  { %v1367_v12 = vadd.f32 %v1117_v11, %v1059_v10  ;;  %v113_v13 = vpop.f32.mrb[1].mxu0  ;;  %v194_v14 = vpop.f32.mrb[0].mxu1 }
  0xdd   :  { %v1369_v15 = vadd.f32 %v1059_v10, %v113_v13  ;;  %v1124_v16 = vpop.f32.mrb[1].mxu1 }
  0xdf   :  { %v198_v17 = vadd.f32 %v194_v14, %v1369_v15 }
  0xe1   :  { %1221 = vtanh.f32 %v198_v17  ;;  %v1063_v19 = vmul.f32 -1.442695, %v198_v17 }
  0xe3   :  { %1223 = vpow2.f32 %v1063_v19 }
  0xeb   :  { %v1222_v18 = vpop.eup %1221 }
  0xec   :  { %208 = vrot.lane.b32.xlu0 %v1222_v18, %s1289_s8 }
  0xed   :  { %v1224_v20 = vpop.eup %1223 }
  0xee   :  { %v202_v21 = vadd.f32 1.0, %v1224_v20 }
  0xf0   :  { %1225 = vrcp.f32 %v202_v21 }
  0xfa   :  { %v1226_v22 = vpop.eup %1225 }
  0xfb   :  { %v206_v25 = vmul.f32 0.0, %v1226_v22 }
 0x15e   :  { %v209_v23 = vpop.permute.xlu0 %208 }
 0x15f   :  { %v211_v24 = vmul.f32 %v1226_v22, %v209_v23 }
 0x161   :  { %213 = vrot.lane.b32.xlu0 %v211_v24, %s1290_s3 }
 0x1d3   :  { %v214_v26 = vpop.permute.xlu0 %213 }
 0x1d4   :  { %v216_v27 = vadd.f32 %v214_v26, %v206_v25 }
 0x1d6   :  { %1227 = vtanh.f32 %v216_v27  ;;  %v310_v43 = vrot.slane %v216_v27, 6 }
 0x1e0   :  { %v1228_v28 = vpop.eup %1227 }
 0x1e1   :  { %219 = vrot.lane.b32.xlu1 %v1228_v28, %s1290_s3 }
 0x253   :  { %v220_v29 = vpop.permute.xlu1 %219 }
 0x254   :  { %v222_v30 = vmul.f32 %v1226_v22, %v220_v29 }
 0x256   :  { %224 = vrot.lane.b32.xlu1 %v222_v30, %s1291_s9 }
 0x2c8   :  { %v225_v31 = vpop.permute.xlu1 %224 }
 0x2c9   :  { %1130 = vmatmul.mubr.msk.f32.vlgmr.msra.gmra.mrb[2].mxu0 %vm124_vm5, %v225_v31 }
 0x2ca   :  { %1198 = vmatpush3.bf16.msra.mxu0 %v1346_v8  ;;  %1143 = vmatprep.mubr.msk.f32.mxu0 %vm1287_vm4, %v1288_v6 }
 0x2cb   :  { %1202 = vmatprep.subr.bf16.mxu0 %v1286_v2 }
 0x39c   :  { %v294_v32 = vpop.f32.mrb[2].mxu0 }
 0x39d   :  { %v299_v33 = vrot.slane %v294_v32, 6  ;;  %v1131_v34 = vpop.f32.mrb[3].mxu0 }
 0x39f   :  { %v301_v35 = vadd.f32 %v299_v33, %v1369_v15 }
 0x3a1   :  { %1229 = vtanh.f32 %v301_v35  ;;  %v1065_v37 = vmul.f32 -1.442695, %v301_v35 }
 0x3a3   :  { %1231 = vpow2.f32 %v1065_v37 }
 0x3ab   :  { %v1230_v36 = vpop.eup %1229 }
 0x3ac   :  { %314 = vrot.lane.b32.xlu0 %v1230_v36, %s1289_s8 }
 0x3ad   :  { %v1232_v38 = vpop.eup %1231 }
 0x3ae   :  { %v305_v39 = vadd.f32 1.0, %v1232_v38 }
 0x3b0   :  { %1233 = vrcp.f32 %v305_v39 }
 0x3ba   :  { %v1234_v40 = vpop.eup %1233 }
 0x3bb   :  { %v312_v44 = vmul.f32 %v1234_v40, %v310_v43 }
 0x41e   :  { %v315_v41 = vpop.permute.xlu0 %314 }
 0x41f   :  { %v317_v42 = vmul.f32 %v1234_v40, %v315_v41 }
 0x421   :  { %319 = vrot.lane.b32.xlu1 %v317_v42, %s1290_s3 }
 0x493   :  { %v320_v45 = vpop.permute.xlu1 %319 }
 0x494   :  { %v322_v46 = vadd.f32 %v320_v45, %v312_v44 }
 0x496   :  { %1235 = vtanh.f32 %v322_v46  ;;  %v417_v63 = vrot.slane %v322_v46, 6 }
 0x4a0   :  { %v1236_v47 = vpop.eup %1235 }
 0x4a1   :  { %325 = vrot.lane.b32.xlu0 %v1236_v47, %s1290_s3 }
 0x513   :  { %v326_v48 = vpop.permute.xlu0 %325 }
 0x514   :  { %v328_v49 = vmul.f32 %v1234_v40, %v326_v48 }
 0x516   :  { %v330_v50 = vrot.slane %v328_v49, 2 }
 0x518   :  { %331 = vrot.lane.b32.xlu1 %v330_v50, %s1291_s9 }
 0x58a   :  { %v332_v51 = vpop.permute.xlu1 %331 }
 0x58b   :  { %1137 = vmatmul.mubr.msk.f32.vlgmr.msra.gmra.mrb[2].mxu1 %vm124_vm5, %v332_v51 }
 0x58c   :  { %1201 = vmatpush3.bf16.msra.mxu1 %v1346_v8  ;;  %1150 = vmatprep.mubr.msk.f32.mxu1 %vm1287_vm4, %v1288_v6 }
 0x58d   :  { %1205 = vmatprep.subr.bf16.mxu1 %v1286_v2 }
 0x65e   :  { %v401_v52 = vpop.f32.mrb[2].mxu1 }
 0x65f   :  { %v406_v53 = vrot.slane %v401_v52, 4  ;;  %v1138_v54 = vpop.f32.mrb[3].mxu1 }
 0x661   :  { %v408_v55 = vadd.f32 %v406_v53, %v1369_v15 }
 0x663   :  { %1237 = vtanh.f32 %v408_v55  ;;  %v1067_v57 = vmul.f32 -1.442695, %v408_v55 }
 0x665   :  { %1239 = vpow2.f32 %v1067_v57 }
 0x66d   :  { %v1238_v56 = vpop.eup %1237 }
 0x66e   :  { %421 = vrot.lane.b32.xlu0 %v1238_v56, %s1289_s8 }
 0x66f   :  { %v1240_v58 = vpop.eup %1239 }
 0x670   :  { %v412_v59 = vadd.f32 1.0, %v1240_v58 }
 0x672   :  { %1241 = vrcp.f32 %v412_v59 }
 0x67c   :  { %v1242_v60 = vpop.eup %1241 }
 0x67d   :  { %v419_v0 = vmul.f32 %v1242_v60, %v417_v63 }
 0x6e0   :  { %v422_v61 = vpop.permute.xlu0 %421 }
 0x6e1   :  { %v424_v62 = vmul.f32 %v1242_v60, %v422_v61 }
 0x6e3   :  { %426 = vrot.lane.b32.xlu1 %v424_v62, %s1290_s3 }
 0x755   :  { %v427_v1 = vpop.permute.xlu1 %426 }
 0x756   :  { %v429_v3 = vadd.f32 %v427_v1, %v419_v0 }
 0x758   :  { %1243 = vtanh.f32 %v429_v3  ;;  %v524_v24 = vrot.slane %v429_v3, 6 }
 0x762   :  { %v1244_v4 = vpop.eup %1243 }
 0x763   :  { %432 = vrot.lane.b32.xlu0 %v1244_v4, %s1290_s3 }
 0x7d5   :  { %v433_v5 = vpop.permute.xlu0 %432 }
 0x7d6   :  { %v435_v7 = vmul.f32 %v1242_v60, %v433_v5 }
 0x7d8   :  { %v437_v9 = vrot.slane %v435_v7, 4 }
 0x7da   :  { %438 = vrot.lane.b32.xlu1 %v437_v9, %s1291_s9 }
 0x84c   :  { %v439_v10 = vpop.permute.xlu1 %438 }
 0x84d   :  { %1144 = vmatmul.mubr.msk.f32.vlgmr.msra.gmra.mrb[4].mxu0 %vm124_vm5, %v439_v10 }
 0x84e   :  { %1204 = vmatpush3.bf16.msra.mxu0 %v1346_v8  ;;  %1157 = vmatprep.mubr.msk.f32.mxu0 %vm1287_vm4, %v1288_v6 }
 0x84f   :  { %1208 = vmatprep.subr.bf16.mxu0 %v1286_v2 }
 0x920   :  { %v508_v11 = vpop.f32.mrb[4].mxu0 }
 0x921   :  { %v513_v13 = vrot.slane %v508_v11, 2  ;;  %v1145_v14 = vpop.f32.mrb[5].mxu0 }
 0x923   :  { %v515_v16 = vadd.f32 %v513_v13, %v1369_v15 }
 0x925   :  { %1245 = vtanh.f32 %v515_v16  ;;  %v1069_v18 = vmul.f32 -1.442695, %v515_v16 }
 0x927   :  { %1247 = vpow2.f32 %v1069_v18 }
 0x92f   :  { %v1246_v17 = vpop.eup %1245 }
 0x930   :  { %528 = vrot.lane.b32.xlu0 %v1246_v17, %s1289_s8 }
 0x931   :  { %v1248_v19 = vpop.eup %1247 }
 0x932   :  { %v519_v20 = vadd.f32 1.0, %v1248_v19 }
 0x934   :  { %1249 = vrcp.f32 %v519_v20 }
 0x93e   :  { %v1250_v21 = vpop.eup %1249 }
 0x93f   :  { %v526_v25 = vmul.f32 %v1250_v21, %v524_v24 }
 0x9a2   :  { %v529_v22 = vpop.permute.xlu0 %528 }
 0x9a3   :  { %v531_v23 = vmul.f32 %v1250_v21, %v529_v22 }
 0x9a5   :  { %533 = vrot.lane.b32.xlu1 %v531_v23, %s1290_s3 }
 0xa17   :  { %v534_v26 = vpop.permute.xlu1 %533 }
 0xa18   :  { %v536_v27 = vadd.f32 %v534_v26, %v526_v25 }
 0xa1a   :  { %1251 = vtanh.f32 %v536_v27  ;;  %v628_v42 = vrot.slane %v536_v27, 6 }
 0xa24   :  { %v1252_v15 = vpop.eup %1251 }
 0xa25   :  { %539 = vrot.lane.b32.xlu0 %v1252_v15, %s1290_s3 }
 0xa97   :  { %v540_v28 = vpop.permute.xlu0 %539 }
 0xa98   :  { %v542_v29 = vmul.f32 %v1250_v21, %v540_v28 }
 0xa9a   :  { %v544_v30 = vrot.slane %v542_v29, 6 }
 0xa9c   :  { %545 = vrot.lane.b32.xlu1 %v544_v30, %s1291_s9 }
 0xb0e   :  { %v546_v31 = vpop.permute.xlu1 %545 }
 0xb0f   :  { %1151 = vmatmul.mubr.msk.f32.vlgmr.msra.gmra.mrb[4].mxu1 %vm124_vm5, %v546_v31 }
 0xb10   :  { %1207 = vmatpush3.bf16.msra.mxu1 %v1346_v8  ;;  %1164 = vmatprep.mubr.msk.f32.mxu1 %vm1287_vm4, %v1288_v6 }
 0xb11   :  { %1211 = vmatprep.subr.bf16.mxu1 %v1286_v2 }
 0xbe2   :  { %v615_v32 = vpop.f32.mrb[4].mxu1 }
 0xbe3   :  { %v619_v33 = vadd.f32 %v615_v32, %v1367_v12  ;;  %v1152_v34 = vpop.f32.mrb[5].mxu1 }
 0xbe5   :  { %1253 = vtanh.f32 %v619_v33  ;;  %v1071_v36 = vmul.f32 -1.442695, %v619_v33 }
 0xbe7   :  { %1255 = vpow2.f32 %v1071_v36 }
 0xbef   :  { %v1254_v35 = vpop.eup %1253 }
 0xbf0   :  { %632 = vrot.lane.b32.xlu0 %v1254_v35, %s1289_s8 }
 0xbf1   :  { %v1256_v37 = vpop.eup %1255 }
 0xbf2   :  { %v623_v38 = vadd.f32 1.0, %v1256_v37 }
 0xbf4   :  { %1257 = vrcp.f32 %v623_v38 }
 0xbfe   :  { %v1258_v39 = vpop.eup %1257 }
 0xbff   :  { %v630_v2 = vmul.f32 %v1258_v39, %v628_v42  ;;  %v969_v42 = vld [vmem:[%s1456_s4 + $0x8] sm:$0xff] }
 0xc62   :  { %v633_v40 = vpop.permute.xlu0 %632 }
 0xc63   :  { %v635_v41 = vmul.f32 %v1258_v39, %v633_v40 }
 0xc65   :  { %637 = vrot.lane.b32.xlu1 %v635_v41, %s1290_s3 }
 0xcd7   :  { %v638_v43 = vpop.permute.xlu1 %637 }
 0xcd8   :  { %v640_v44 = vadd.f32 %v638_v43, %v630_v2 }
 0xcda   :  { %1259 = vtanh.f32 %v640_v44  ;;  %v734_v59 = vrot.slane %v640_v44, 6  ;;  %v11_v44 = vstv %s1457_s5 }
 0xcdb   :  { %12 = vst [vmem:[#allocation2] sm:$0x1] %v11_v44 }
 0xce4   :  { %v1260_v45 = vpop.eup %1259 }
 0xce5   :  { %643 = vrot.lane.b32.xlu0 %v1260_v45, %s1290_s3 }
 0xd57   :  { %v644_v46 = vpop.permute.xlu0 %643 }
 0xd58   :  { %v646_v47 = vmul.f32 %v1258_v39, %v644_v46 }
 0xd5a   :  { %648 = vrot.lane.b32.xlu1 %v646_v47, %s1291_s9 }
 0xdcc   :  { %v649_v48 = vpop.permute.xlu1 %648 }
 0xdcd   :  { %1158 = vmatmul.mubr.msk.f32.vlgmr.msra.gmra.mrb[6].mxu0 %vm124_vm5, %v649_v48 }
 0xdce   :  { %1210 = vmatpush3.bf16.msra.mxu0 %v1346_v8  ;;  %1171 = vmatprep.mubr.msk.f32.mxu0 %vm1287_vm4, %v1288_v6 }
 0xea0   :  { %v718_v49 = vpop.f32.mrb[6].mxu0 }
 0xea1   :  { %v723_v50 = vrot.slane %v718_v49, 6  ;;  %v1159_v51 = vpop.f32.mrb[7].mxu0 }
 0xea3   :  { %v725_v52 = vadd.f32 %v723_v50, %v1367_v12  ;;  %v1078_v50 = vld [vmem:[#allocation2] ss:$0 sm:$0xff] }
 0xea5   :  { %1261 = vtanh.f32 %v725_v52  ;;  %v1073_v54 = vmul.f32 -1.442695, %v725_v52 }
 0xea7   :  { %1263 = vpow2.f32 %v1073_v54 }
 0xeaf   :  { %v1262_v53 = vpop.eup %1261 }
 0xeb0   :  { %738 = vrot.lane.b32.xlu0 %v1262_v53, %s1289_s8 }
 0xeb1   :  { %v1264_v55 = vpop.eup %1263 }
 0xeb2   :  { %v729_v56 = vadd.f32 1.0, %v1264_v55 }
 0xeb4   :  { %1265 = vrcp.f32 %v729_v56 }
 0xebe   :  { %v1266_v57 = vpop.eup %1265 }
 0xebf   :  { %v736_v60 = vmul.f32 %v1266_v57, %v734_v59 }
 0xf22   :  { %v739_v58 = vpop.permute.xlu0 %738 }
 0xf23   :  { %v741_v8 = vmul.f32 %v1266_v57, %v739_v58 }
 0xf25   :  { %743 = vrot.lane.b32.xlu1 %v741_v8, %s1290_s3 }
 0xf97   :  { %v744_v61 = vpop.permute.xlu1 %743 }
 0xf98   :  { %v746_v62 = vadd.f32 %v744_v61, %v736_v60 }
 0xf9a   :  { %1267 = vtanh.f32 %v746_v62 }
 0xfa4   :  { %v1268_v63 = vpop.eup %1267 }
 0xfa5   :  { %749 = vrot.lane.b32.xlu0 %v1268_v63, %s1290_s3 }
0x1017   :  { %v750_v0 = vpop.permute.xlu0 %749 }
0x1018   :  { %v752_v1 = vmul.f32 %v1266_v57, %v750_v0 }
0x101a   :  { %v754_v3 = vrot.slane %v752_v1, 2 }
0x101c   :  { %755 = vrot.lane.b32.xlu1 %v754_v3, %s1291_s9 }
0x108e   :  { %v756_v4 = vpop.permute.xlu1 %755 }
0x108f   :  { %1165 = vmatmul.mubr.msk.f32.vlgmr.msra.gmra.mrb[6].mxu1 %vm124_vm5, %v756_v4 }
0x1090   :  { %1178 = vmatprep.mubr.msk.f32.mxu1 %vm1287_vm4, %v1288_v6  ;;  %v841_v6 = vrot.slane %v746_v62, 6 }
0x1162   :  { %v825_v5 = vpop.f32.mrb[6].mxu1 }
0x1163   :  { %v830_v7 = vrot.slane %v825_v5, 4  ;;  %v1166_v9 = vpop.f32.mrb[7].mxu1 }
0x1165   :  { %v832_v10 = vadd.f32 %v830_v7, %v1367_v12 }
0x1167   :  { %1269 = vtanh.f32 %v832_v10  ;;  %v1075_v13 = vmul.f32 -1.442695, %v832_v10 }
0x1169   :  { %1271 = vpow2.f32 %v1075_v13 }
0x1171   :  { %v1270_v11 = vpop.eup %1269 }
0x1172   :  { %845 = vrot.lane.b32.xlu0 %v1270_v11, %s1289_s8 }
0x1173   :  { %v1272_v14 = vpop.eup %1271 }
0x1174   :  { %v836_v16 = vadd.f32 1.0, %v1272_v14 }
0x1176   :  { %1273 = vrcp.f32 %v836_v16 }
0x1180   :  { %v1274_v17 = vpop.eup %1273 }
0x1181   :  { %v843_v20 = vmul.f32 %v1274_v17, %v841_v6 }
0x11e4   :  { %v846_v18 = vpop.permute.xlu0 %845 }
0x11e5   :  { %v848_v19 = vmul.f32 %v1274_v17, %v846_v18 }
0x11e7   :  { %850 = vrot.lane.b32.xlu1 %v848_v19, %s1290_s3 }
0x1259   :  { %v851_v21 = vpop.permute.xlu1 %850 }
0x125a   :  { %v853_v22 = vadd.f32 %v851_v21, %v843_v20 }
0x125c   :  { %1275 = vtanh.f32 %v853_v22  ;;  %v948_v38 = vrot.slane %v853_v22, 6 }
0x1266   :  { %v1276_v23 = vpop.eup %1275 }
0x1267   :  { %856 = vrot.lane.b32.xlu0 %v1276_v23, %s1290_s3 }
0x12d9   :  { %v857_v24 = vpop.permute.xlu0 %856 }
0x12da   :  { %v859_v25 = vmul.f32 %v1274_v17, %v857_v24 }
0x12dc   :  { %v861_v26 = vrot.slane %v859_v25, 4 }
0x12de   :  { %862 = vrot.lane.b32.xlu1 %v861_v26, %s1291_s9 }
0x1350   :  { %v863_v27 = vpop.permute.xlu1 %862 }
0x1351   :  { %1172 = vmatmul.mubr.msk.f32.vlgmr.msra.gmra.mrb[8].mxu0 %vm124_vm5, %v863_v27 }
0x1424   :  { %v932_v15 = vpop.f32.mrb[8].mxu0 }
0x1425   :  { %v937_v28 = vrot.slane %v932_v15, 2  ;;  %v1173_v29 = vpop.f32.mrb[9].mxu0 }
0x1427   :  { %v939_v30 = vadd.f32 %v937_v28, %v1367_v12  ;;  %v968_v12 = vld [vmem:[%s1456_s4] sm:$0xff] }
0x1428   :  { %v1212_v2 = vpack.c.bf16 %v969_v42, %v968_v12 }
0x1429   :  { %1277 = vtanh.f32 %v939_v30  ;;  %v1077_v32 = vmul.f32 -1.442695, %v939_v30 }
0x142a   :  { %1213 = vmatpush3.bf16.msra.mxu1 %v1212_v2 }
0x142b   :  { %1279 = vpow2.f32 %v1077_v32 }
0x1433   :  { %v1278_v31 = vpop.eup %1277 }
0x1434   :  { %952 = vrot.lane.b32.xlu0 %v1278_v31, %s1289_s8 }
0x1435   :  { %v1280_v33 = vpop.eup %1279 }
0x1436   :  { %v943_v34 = vadd.f32 1.0, %v1280_v33 }
0x1438   :  { %1281 = vrcp.f32 %v943_v34 }
0x1442   :  { %v1282_v35 = vpop.eup %1281 }
0x1443   :  { %v950_v39 = vmul.f32 %v1282_v35, %v948_v38 }
0x14a6   :  { %v953_v36 = vpop.permute.xlu0 %952 }
0x14a7   :  { %v955_v37 = vmul.f32 %v1282_v35, %v953_v36 }
0x14a9   :  { %957 = vrot.lane.b32.xlu1 %v955_v37, %s1290_s3 }
0x151b   :  { %v958_v40 = vpop.permute.xlu1 %957 }
0x151c   :  { %v960_v41 = vadd.f32 %v958_v40, %v950_v39 }
0x151e   :  { %1283 = vtanh.f32 %v960_v41 }
0x1528   :  { %v1284_v43 = vpop.eup %1283 }
0x1529   :  { %963 = vrot.lane.b32.xlu0 %v1284_v43, %s1290_s3 }
0x159b   :  { %v964_v45 = vpop.permute.xlu0 %963 }
0x159c   :  { %v966_v46 = vmul.f32 %v1282_v35, %v964_v45 }
0x159e   :  { %v967_v47 = vmax.f32 %v966_v46, 0.0 }
0x15a0   :  { %v978_v48 = vrot.slane %v967_v47, 6 }
0x15a2   :  { %979 = vrot.lane.b32.xlu1 %v978_v48, %s1291_s9 }
0x1614   :  { %v980_v49 = vpop.permute.xlu1 %979 }
0x1615   :  { %1179 = vmatmul.mubr.msk.f32.vlgmr.msra.gmra.mrb[8].mxu1 %vm124_vm5, %v980_v49 }
0x16e8   :  { %v1049_v51 = vpop.f32.mrb[8].mxu1 }
0x16e9   :  { %v1050_v52 = vadd.f32 %v1078_v50, %v1049_v51  ;;  %v1180_v53 = vpop.f32.mrb[9].mxu1 }
0x16eb   :  { %1054 = vst.msk [vmem:[%s1458_s6] sm:$0x3] %vm1053_vm6, %v1050_v52 }

</bundles_post_ra>
